<compile_context>
chip_gen: v6e
topology: v6e:2x2x1
jax: 0.10.0
libtpu: 0.0.40
codegen_flags: <defaults>
</compile_context>

<pallas_src>
import functools

import jax
import jax.numpy as jnp
from jax.experimental import pallas as pl
from jax.experimental.pallas import tpu as pltpu


def _fused_gin2_kernel(aT_ref, xT_ref,
                       w1a_ref, b1a_ref, w2a_ref, b2a_ref,
                       w1b_ref, b1b_ref, w2b_ref, b2b_ref,
                       oT_ref,
                       agg1_scr, y1_scr, agg2_scr,
                       *, bt, n_pad):
    """Fused 2-layer GIN for one batch tile, channels-first / nodes-on-lanes.

    aT_ref : (Np, Np)        A_hat^T, bf16 (small-integer entries -> exact)
    xT_ref : (Cin, bt*Np)    bf16, rows = channels, lanes ordered [batch][node]
    w*_ref : bf16 PyTorch (out, in) layout weights;  b*_ref : (out, 1) f32 biases
    oT_ref : (Cout, bt*Np)   f32 output slab
    scratches: bf16 VMEM, keep intermediates on-chip between the two layers.
    """
    f32 = jnp.float32
    bf16 = jnp.bfloat16

    a_bf = aT_ref[...]                                             # (Np, Np) bf16

    # ---- layer 1: neighbor aggregation  agg^T = x^T @ A_hat^T (per-batch lane slice) ----
    for b in range(bt):                                            # static, 128-aligned slices
        sl = slice(b * n_pad, (b + 1) * n_pad)
        agg1_scr[:, sl] = jnp.dot(xT_ref[:, sl], a_bf,
                                  preferred_element_type=f32).astype(bf16)

    # ---- layer 1 MLP: one batch-wide MXU call per Linear (lane dim = bt*Np) ----
    h = jnp.dot(w1a_ref[...], agg1_scr[...],
                preferred_element_type=f32) + b1a_ref[...]          # (H1, bt*Np) f32
    h = jnp.maximum(h, 0.0)                                         # ReLU on the VPU
    y1_scr[...] = (jnp.dot(w2a_ref[...], h.astype(bf16),
                           preferred_element_type=f32) + b2a_ref[...]).astype(bf16)

    # ---- layer 2 ----------------------------------------------------------------
    for b in range(bt):
        sl = slice(b * n_pad, (b + 1) * n_pad)
        agg2_scr[:, sl] = jnp.dot(y1_scr[:, sl], a_bf,
                                  preferred_element_type=f32).astype(bf16)

    h = jnp.dot(w1b_ref[...], agg2_scr[...],
                preferred_element_type=f32) + b1b_ref[...]          # (H2, bt*Np) f32
    h = jnp.maximum(h, 0.0)
    oT_ref[...] = (jnp.dot(w2b_ref[...], h.astype(bf16),
                           preferred_element_type=f32) + b2b_ref[...]).astype(oT_ref.dtype)


def _pick_batch_tile(batch):
    """Largest divisor of `batch` that still gives >= 2 grid steps (megacore / pipelining)."""
    if batch <= 1:
        return 1
    for bt in range(batch // 2, 0, -1):
        if batch % bt == 0:
            return bt
    return 1


def gin_two_layer_fused(graph_sig, a_hat, params1, params2, bt=None):
    """Apply both stacked GINConv layers in one fused pallas_call.

    graph_sig: (B, N, Cin) f32
    a_hat    : (N, N) f32, A_hat = I + A with A[dst, src] += 1 per edge (src -> dst)
    params*  : (w1 (H, Cin), b1 (H,), w2 (Cout, H), b2 (Cout,)) in PyTorch (out,in) layout
    returns  : (B, N, Cout) f32
    """
    B, N, c_in = graph_sig.shape
    w1a, b1a, w2a, b2a = params1
    w1b, b1b, w2b, b2b = params2
    h1, c_out = w1a.shape[0], w2a.shape[0]
    h2 = w1b.shape[0]

    if bt is None:
        bt = _pick_batch_tile(B)
    assert B % bt == 0, "batch tile must divide the batch"

    # Pad the node axis to a lane-dense multiple of 128. Padded nodes have zero features
    # and zero A_hat rows/cols, so they neither send nor receive messages; their (bias-only)
    # outputs are sliced away below.
    n_pad = ((N + 127) // 128) * 128
    x_p = jnp.zeros((B, n_pad, c_in), jnp.float32).at[:, :N, :].set(
        graph_sig.astype(jnp.float32))
    a_p = jnp.zeros((n_pad, n_pad), jnp.float32).at[:N, :N].set(a_hat.astype(jnp.float32))

    # Channels-first, batch-stacked on lanes: xT[c, b*Np + n] = x[b, n, c]
    xT = jnp.transpose(x_p, (2, 0, 1)).reshape(c_in, B * n_pad).astype(jnp.bfloat16)
    aT = a_p.T.astype(jnp.bfloat16)              # exact: small-integer entries

    lanes = bt * n_pad
    grid = (B // bt,)
    kernel = functools.partial(_fused_gin2_kernel, bt=bt, n_pad=n_pad)

    flops = 2 * B * n_pad * (n_pad * c_in + c_in * h1 + h1 * c_out
                             + n_pad * c_out + c_out * h2 + h2 * c_out)
    bytes_accessed = (aT.size * 2 + xT.size * 2 + B * n_pad * c_out * 4
                      + 2 * (w1a.size + w2a.size + w1b.size + w2b.size)
                      + 4 * (b1a.size + b2a.size + b1b.size + b2b.size))

    oT = pl.pallas_call(
        kernel,
        out_shape=jax.ShapeDtypeStruct((c_out, B * n_pad), jnp.float32),
        grid_spec=pltpu.PrefetchScalarGridSpec(
            num_scalar_prefetch=0,
            grid=grid,
            in_specs=[
                pl.BlockSpec((n_pad, n_pad), lambda i: (0, 0)),     # A_hat^T (constant)
                pl.BlockSpec((c_in, lanes), lambda i: (0, i)),      # x^T batch tile
                pl.BlockSpec((h1, c_in), lambda i: (0, 0)),
                pl.BlockSpec((h1, 1), lambda i: (0, 0)),
                pl.BlockSpec((c_out, h1), lambda i: (0, 0)),
                pl.BlockSpec((c_out, 1), lambda i: (0, 0)),
                pl.BlockSpec((h2, c_out), lambda i: (0, 0)),
                pl.BlockSpec((h2, 1), lambda i: (0, 0)),
                pl.BlockSpec((c_out, h2), lambda i: (0, 0)),
                pl.BlockSpec((c_out, 1), lambda i: (0, 0)),
            ],
            out_specs=pl.BlockSpec((c_out, lanes), lambda i: (0, i)),
            scratch_shapes=[
                pltpu.VMEM((c_in, lanes), jnp.bfloat16),    # layer-1 aggregation
                pltpu.VMEM((c_out, lanes), jnp.bfloat16),   # layer-1 output (never hits HBM)
                pltpu.VMEM((c_out, lanes), jnp.bfloat16),   # layer-2 aggregation
            ],
        ),
        compiler_params=pltpu.CompilerParams(
            dimension_semantics=("parallel",),
            vmem_limit_bytes=48 * 1024 * 1024,   # stays under v7x's 64 MiB per-TC VMEM
        ),
        cost_estimate=pl.CostEstimate(flops=flops, transcendentals=0,
                                      bytes_accessed=bytes_accessed),
    )(aT, xT,
      w1a.astype(jnp.bfloat16), b1a.reshape(h1, 1).astype(jnp.float32),
      w2a.astype(jnp.bfloat16), b2a.reshape(c_out, 1).astype(jnp.float32),
      w1b.astype(jnp.bfloat16), b1b.reshape(h2, 1).astype(jnp.float32),
      w2b.astype(jnp.bfloat16), b2b.reshape(c_out, 1).astype(jnp.float32))

    # (Cout, B*Np) -> (B, Np, Cout) -> drop node padding
    return oT.reshape(c_out, B, n_pad).transpose(1, 2, 0)[:, :N, :]


def gnn_conv_layer_forward(graph_sig, a_hat, layer_params):
    """Full GNNConvLayer.forward for neighbors_count=2 (both GIN layers fused in one kernel)."""
    assert len(layer_params) == 2, "fused kernel implements neighbors_count=2"
    return gin_two_layer_fused(graph_sig, a_hat, layer_params[0], layer_params[1])


def make_gin_mlp_params(key, c_in, c_out):
    """PyTorch-style init for Sequential(Linear(c_in, 4*c_in), ReLU, Linear(4*c_in, c_out)).

    Weights in PyTorch (out_features, in_features) layout.
    """
    h = 4 * c_in
    k1, k2, k3, k4 = jax.random.split(key, 4)
    s1 = float(c_in) ** -0.5
    s2 = float(h) ** -0.5
    w1 = jax.random.uniform(k1, (h, c_in), jnp.float32, -s1, s1)
    b1 = jax.random.uniform(k2, (h,), jnp.float32, -s1, s1)
    w2 = jax.random.uniform(k3, (c_out, h), jnp.float32, -s2, s2)
    b2 = jax.random.uniform(k4, (c_out,), jnp.float32, -s2, s2)
    return w1, b1, w2, b2


def build_a_hat(edge_index, n_nodes):
    """A_hat = I + A with A[dst, src] += 1 for each edge (src -> dst)."""
    src, dst = edge_index
    a = jnp.zeros((n_nodes, n_nodes), jnp.float32)
    a = a.at[dst, src].add(1.0)
    return a + jnp.eye(n_nodes, dtype=jnp.float32)


def _bf16_round(t):
    # Round-to-nearest-even bf16 rounding that XLA will not elide (mirrors the
    # in-kernel bf16 MXU operands for an apples-to-apples reference).
    return jax.lax.reduce_precision(t, exponent_bits=8, mantissa_bits=7)


def ref_forward(graph_sig, a_hat, layer_params):
    """Pure-JAX reference with the same bf16-operand / f32-accumulate math."""
    x = graph_sig.astype(jnp.float32)
    for (w1, b1, w2, b2) in layer_params:
        agg = jnp.einsum("ij,bjc->bic", _bf16_round(a_hat), _bf16_round(x))
        h = jnp.einsum("bnc,hc->bnh", _bf16_round(agg), _bf16_round(w1)) + b1
        h = jnp.maximum(h, 0.0)
        x = jnp.einsum("bnh,oh->bno", _bf16_round(h), _bf16_round(w2)) + b2
    return x


if __name__ == "__main__":
    # Small, deterministic example consistent with the module's (B, N, C_in) input.
    B, N, C_in, C_out = 2, 16, 4, 8
    K = 2  # neighbors_count -> number of stacked GIN layers (fused)

    key = jax.random.PRNGKey(0)
    kx, kp1, kp2 = jax.random.split(key, 3)

    graph_sig = jax.random.normal(kx, (B, N, C_in), jnp.float32)

    # Deterministic bidirectional ring graph, edge_index shape (2, 2N)
    nodes = jnp.arange(N)
    nxt = (nodes + 1) % N
    src = jnp.concatenate([nodes, nxt])
    dst = jnp.concatenate([nxt, nodes])
    edge_index = jnp.stack([src, dst])

    a_hat = build_a_hat(edge_index, N)

    # Layer 0: C_in -> C_out; Layer 1: C_out -> C_out
    layer_params = [make_gin_mlp_params(kp1, C_in, C_out),
                    make_gin_mlp_params(kp2, C_out, C_out)]

    out = gnn_conv_layer_forward(graph_sig, a_hat, layer_params)
    out = jax.block_until_ready(out)

    ref = ref_forward(graph_sig, a_hat, layer_params)
    assert out.shape == (B, N, C_out)
    assert jnp.allclose(out, ref, atol=2e-3, rtol=2e-3), float(jnp.max(jnp.abs(out - ref)))

    print("KERNEL_OK")
</pallas_src>

<mosaic_0001>
module attributes {stable_mosaic.version = 11 : i64} {
  func.func @_fused_gin2_kernel(%arg0: i32, %arg1: memref<128x128xbf16, #tpu.memory_space<vmem>>, %arg2: memref<4x128xbf16, #tpu.memory_space<vmem>>, %arg3: memref<16x4xbf16, #tpu.memory_space<vmem>>, %arg4: memref<16x1xf32, #tpu.memory_space<vmem>>, %arg5: memref<8x16xbf16, #tpu.memory_space<vmem>>, %arg6: memref<8x1xf32, #tpu.memory_space<vmem>>, %arg7: memref<32x8xbf16, #tpu.memory_space<vmem>>, %arg8: memref<32x1xf32, #tpu.memory_space<vmem>>, %arg9: memref<8x32xbf16, #tpu.memory_space<vmem>>, %arg10: memref<8x1xf32, #tpu.memory_space<vmem>>, %arg11: memref<8x128xf32, #tpu.memory_space<vmem>>, %arg12: memref<4x128xbf16, #tpu.memory_space<vmem>>, %arg13: memref<8x128xbf16, #tpu.memory_space<vmem>>, %arg14: memref<8x128xbf16, #tpu.memory_space<vmem>>) attributes {dimension_semantics = [#tpu.dimension_semantics<parallel>], iteration_bounds = array<i64: 2>, scalar_prefetch = 0 : i64, scratch_operands = 3 : i64, tpu.core_type = #tpu.core_type<tc>, window_params = [{pipeline_mode = #tpu.pipeline_mode<synchronous>, transform_indices = @transform_0, window_bounds = array<i64: 128, 128>}, {transform_indices = @transform_1, window_bounds = array<i64: 4, 128>}, {pipeline_mode = #tpu.pipeline_mode<synchronous>, transform_indices = @transform_2, window_bounds = array<i64: 16, 4>}, {pipeline_mode = #tpu.pipeline_mode<synchronous>, transform_indices = @transform_3, window_bounds = array<i64: 16, 1>}, {pipeline_mode = #tpu.pipeline_mode<synchronous>, transform_indices = @transform_4, window_bounds = array<i64: 8, 16>}, {pipeline_mode = #tpu.pipeline_mode<synchronous>, transform_indices = @transform_5, window_bounds = array<i64: 8, 1>}, {pipeline_mode = #tpu.pipeline_mode<synchronous>, transform_indices = @transform_6, window_bounds = array<i64: 32, 8>}, {pipeline_mode = #tpu.pipeline_mode<synchronous>, transform_indices = @transform_7, window_bounds = array<i64: 32, 1>}, {pipeline_mode = #tpu.pipeline_mode<synchronous>, transform_indices = @transform_8, window_bounds = array<i64: 8, 32>}, {pipeline_mode = #tpu.pipeline_mode<synchronous>, transform_indices = @transform_9, window_bounds = array<i64: 8, 1>}, {transform_indices = @transform_10, window_bounds = array<i64: 8, 128>}]} {
    %c0 = arith.constant 0 : index
    %c0_0 = arith.constant 0 : index
    %0 = vector.load %arg1[%c0, %c0_0] : memref<128x128xbf16, #tpu.memory_space<vmem>>, vector<128x128xbf16>
    %c0_1 = arith.constant 0 : index
    %c0_2 = arith.constant 0 : index
    %1 = vector.load %arg2[%c0_1, %c0_2] : memref<4x128xbf16, #tpu.memory_space<vmem>>, vector<4x128xbf16>
    %cst = arith.constant dense<0.000000e+00> : vector<4x128xf32>
    %2 = tpu.matmul %1, %0, %cst {dimension_numbers = #tpu.dot_dimension_numbers<[1], [0], [0], [1], [0, 0, 1, 1], [], []>} : vector<4x128xbf16>, vector<128x128xbf16>, vector<4x128xf32> -> vector<4x128xf32>
    %3 = arith.truncf %2 : vector<4x128xf32> to vector<4x128xbf16>
    %c0_3 = arith.constant 0 : index
    %c0_4 = arith.constant 0 : index
    %4 = vector.load %arg12[%c0_3, %c0_4] : memref<4x128xbf16, #tpu.memory_space<vmem>>, vector<4x128xbf16>
    tpu.vector_store %arg12[%c0_3, %c0_4], %3 {strides = array<i32>} : memref<4x128xbf16, #tpu.memory_space<vmem>>, vector<4x128xbf16>,
    %c0_5 = arith.constant 0 : index
    %c0_6 = arith.constant 0 : index
    %5 = vector.load %arg3[%c0_5, %c0_6] : memref<16x4xbf16, #tpu.memory_space<vmem>>, vector<16x4xbf16>
    %c0_7 = arith.constant 0 : index
    %c0_8 = arith.constant 0 : index
    %6 = vector.load %arg12[%c0_7, %c0_8] : memref<4x128xbf16, #tpu.memory_space<vmem>>, vector<4x128xbf16>
    %cst_9 = arith.constant dense<0.000000e+00> : vector<16x128xf32>
    %7 = tpu.matmul %5, %6, %cst_9 {dimension_numbers = #tpu.dot_dimension_numbers<[1], [0], [0], [1], [0, 0, 1, 1], [], []>} : vector<16x4xbf16>, vector<4x128xbf16>, vector<16x128xf32> -> vector<16x128xf32>
    %c0_10 = arith.constant 0 : index
    %c0_11 = arith.constant 0 : index
    %8 = vector.load %arg4[%c0_10, %c0_11] : memref<16x1xf32, #tpu.memory_space<vmem>>, vector<16x1xf32>
    %9 = vector.broadcast %8 : vector<16x1xf32> to vector<16x128xf32>
    %10 = arith.addf %7, %9 : vector<16x128xf32>
    %cst_12 = arith.constant 0.000000e+00 : f32
    %11 = vector.broadcast %cst_12 : f32 to vector<16x128xf32>
    %12 = arith.maximumf %10, %11 : vector<16x128xf32>
    %c0_13 = arith.constant 0 : index
    %c0_14 = arith.constant 0 : index
    %13 = vector.load %arg5[%c0_13, %c0_14] : memref<8x16xbf16, #tpu.memory_space<vmem>>, vector<8x16xbf16>
    %14 = arith.truncf %12 : vector<16x128xf32> to vector<16x128xbf16>
    %cst_15 = arith.constant dense<0.000000e+00> : vector<8x128xf32>
    %15 = tpu.matmul %13, %14, %cst_15 {dimension_numbers = #tpu.dot_dimension_numbers<[1], [0], [0], [1], [0, 0, 1, 1], [], []>} : vector<8x16xbf16>, vector<16x128xbf16>, vector<8x128xf32> -> vector<8x128xf32>
    %c0_16 = arith.constant 0 : index
    %c0_17 = arith.constant 0 : index
    %16 = vector.load %arg6[%c0_16, %c0_17] : memref<8x1xf32, #tpu.memory_space<vmem>>, vector<8x1xf32>
    %17 = vector.broadcast %16 : vector<8x1xf32> to vector<8x128xf32>
    %18 = arith.addf %15, %17 : vector<8x128xf32>
    %19 = arith.truncf %18 : vector<8x128xf32> to vector<8x128xbf16>
    %c0_18 = arith.constant 0 : index
    %c0_19 = arith.constant 0 : index
    %20 = vector.load %arg13[%c0_18, %c0_19] : memref<8x128xbf16, #tpu.memory_space<vmem>>, vector<8x128xbf16>
    tpu.vector_store %arg13[%c0_18, %c0_19], %19 {strides = array<i32>} : memref<8x128xbf16, #tpu.memory_space<vmem>>, vector<8x128xbf16>,
    %c0_20 = arith.constant 0 : index
    %c0_21 = arith.constant 0 : index
    %21 = vector.load %arg13[%c0_20, %c0_21] : memref<8x128xbf16, #tpu.memory_space<vmem>>, vector<8x128xbf16>
    %cst_22 = arith.constant dense<0.000000e+00> : vector<8x128xf32>
    %22 = tpu.matmul %21, %0, %cst_22 {dimension_numbers = #tpu.dot_dimension_numbers<[1], [0], [0], [1], [0, 0, 1, 1], [], []>} : vector<8x128xbf16>, vector<128x128xbf16>, vector<8x128xf32> -> vector<8x128xf32>
    %23 = arith.truncf %22 : vector<8x128xf32> to vector<8x128xbf16>
    %c0_23 = arith.constant 0 : index
    %c0_24 = arith.constant 0 : index
    %24 = vector.load %arg14[%c0_23, %c0_24] : memref<8x128xbf16, #tpu.memory_space<vmem>>, vector<8x128xbf16>
    tpu.vector_store %arg14[%c0_23, %c0_24], %23 {strides = array<i32>} : memref<8x128xbf16, #tpu.memory_space<vmem>>, vector<8x128xbf16>,
    %c0_25 = arith.constant 0 : index
    %c0_26 = arith.constant 0 : index
    %25 = vector.load %arg7[%c0_25, %c0_26] : memref<32x8xbf16, #tpu.memory_space<vmem>>, vector<32x8xbf16>
    %c0_27 = arith.constant 0 : index
    %c0_28 = arith.constant 0 : index
    %26 = vector.load %arg14[%c0_27, %c0_28] : memref<8x128xbf16, #tpu.memory_space<vmem>>, vector<8x128xbf16>
    %cst_29 = arith.constant dense<0.000000e+00> : vector<32x128xf32>
    %27 = tpu.matmul %25, %26, %cst_29 {dimension_numbers = #tpu.dot_dimension_numbers<[1], [0], [0], [1], [0, 0, 1, 1], [], []>} : vector<32x8xbf16>, vector<8x128xbf16>, vector<32x128xf32> -> vector<32x128xf32>
    %c0_30 = arith.constant 0 : index
    %c0_31 = arith.constant 0 : index
    %28 = vector.load %arg8[%c0_30, %c0_31] : memref<32x1xf32, #tpu.memory_space<vmem>>, vector<32x1xf32>
    %29 = vector.broadcast %28 : vector<32x1xf32> to vector<32x128xf32>
    %30 = arith.addf %27, %29 : vector<32x128xf32>
    %cst_32 = arith.constant 0.000000e+00 : f32
    %31 = vector.broadcast %cst_32 : f32 to vector<32x128xf32>
    %32 = arith.maximumf %30, %31 : vector<32x128xf32>
    %c0_33 = arith.constant 0 : index
    %c0_34 = arith.constant 0 : index
    %33 = vector.load %arg9[%c0_33, %c0_34] : memref<8x32xbf16, #tpu.memory_space<vmem>>, vector<8x32xbf16>
    %34 = arith.truncf %32 : vector<32x128xf32> to vector<32x128xbf16>
    %cst_35 = arith.constant dense<0.000000e+00> : vector<8x128xf32>
    %35 = tpu.matmul %33, %34, %cst_35 {dimension_numbers = #tpu.dot_dimension_numbers<[1], [0], [0], [1], [0, 0, 1, 1], [], []>} : vector<8x32xbf16>, vector<32x128xbf16>, vector<8x128xf32> -> vector<8x128xf32>
    %c0_36 = arith.constant 0 : index
    %c0_37 = arith.constant 0 : index
    %36 = vector.load %arg10[%c0_36, %c0_37] : memref<8x1xf32, #tpu.memory_space<vmem>>, vector<8x1xf32>
    %37 = vector.broadcast %36 : vector<8x1xf32> to vector<8x128xf32>
    %38 = arith.addf %35, %37 : vector<8x128xf32>
    %c0_38 = arith.constant 0 : index
    %c0_39 = arith.constant 0 : index
    %39 = vector.load %arg11[%c0_38, %c0_39] : memref<8x128xf32, #tpu.memory_space<vmem>>, vector<8x128xf32>
    tpu.vector_store %arg11[%c0_38, %c0_39], %38 {strides = array<i32>} : memref<8x128xf32, #tpu.memory_space<vmem>>, vector<8x128xf32>,
    return
  }
  func.func @transform_0(%arg0: i32) -> (i32, i32) {
    %c0_i32 = arith.constant 0 : i32
    %c0_i32_0 = arith.constant 0 : i32
    %c0_i32_1 = arith.constant 0 : i32
    return %c0_i32, %c0_i32_0 : i32, i32
  }
  func.func @transform_1(%arg0: i32) -> (i32, i32) {
    %c0_i32 = arith.constant 0 : i32
    %c0_i32_0 = arith.constant 0 : i32
    return %c0_i32, %arg0 : i32, i32
  }
  func.func @transform_2(%arg0: i32) -> (i32, i32) {
    %c0_i32 = arith.constant 0 : i32
    %c0_i32_0 = arith.constant 0 : i32
    %c0_i32_1 = arith.constant 0 : i32
    return %c0_i32, %c0_i32_0 : i32, i32
  }
  func.func @transform_3(%arg0: i32) -> (i32, i32) {
    %c0_i32 = arith.constant 0 : i32
    %c0_i32_0 = arith.constant 0 : i32
    %c0_i32_1 = arith.constant 0 : i32
    return %c0_i32, %c0_i32_0 : i32, i32
  }
  func.func @transform_4(%arg0: i32) -> (i32, i32) {
    %c0_i32 = arith.constant 0 : i32
    %c0_i32_0 = arith.constant 0 : i32
    %c0_i32_1 = arith.constant 0 : i32
    return %c0_i32, %c0_i32_0 : i32, i32
  }
  func.func @transform_5(%arg0: i32) -> (i32, i32) {
    %c0_i32 = arith.constant 0 : i32
    %c0_i32_0 = arith.constant 0 : i32
    %c0_i32_1 = arith.constant 0 : i32
    return %c0_i32, %c0_i32_0 : i32, i32
  }
  func.func @transform_6(%arg0: i32) -> (i32, i32) {
    %c0_i32 = arith.constant 0 : i32
    %c0_i32_0 = arith.constant 0 : i32
    %c0_i32_1 = arith.constant 0 : i32
    return %c0_i32, %c0_i32_0 : i32, i32
  }
  func.func @transform_7(%arg0: i32) -> (i32, i32) {
    %c0_i32 = arith.constant 0 : i32
    %c0_i32_0 = arith.constant 0 : i32
    %c0_i32_1 = arith.constant 0 : i32
    return %c0_i32, %c0_i32_0 : i32, i32
  }
  func.func @transform_8(%arg0: i32) -> (i32, i32) {
    %c0_i32 = arith.constant 0 : i32
    %c0_i32_0 = arith.constant 0 : i32
    %c0_i32_1 = arith.constant 0 : i32
    return %c0_i32, %c0_i32_0 : i32, i32
  }
  func.func @transform_9(%arg0: i32) -> (i32, i32) {
    %c0_i32 = arith.constant 0 : i32
    %c0_i32_0 = arith.constant 0 : i32
    %c0_i32_1 = arith.constant 0 : i32
    return %c0_i32, %c0_i32_0 : i32, i32
  }
  func.func @transform_10(%arg0: i32) -> (i32, i32) {
    %c0_i32 = arith.constant 0 : i32
    %c0_i32_0 = arith.constant 0 : i32
    return %c0_i32, %arg0 : i32, i32
  }
}

</mosaic_0001>

<bundles_post_ra>
// kernel: tpu_custom_call.1
= control target key start
LH: loop header
LB: loop body
LE: loop exit
PB: predicated region body
PF: predicated region fallthrough
CT: control target
= control target key end

     0   :  { %15 = vsyncpa [#allocation6], 0  ;;  %s1382_s0 = inlined_call_operand.vmem [shape: bf16[128,128], index: 0, kind: input, shape index: {}]   ;;  %s1383_s1 = inlined_call_operand.vmem [shape: bf16[4,256], index: 1, kind: input, shape index: {}]   ;;  %s1384_s2 = inlined_call_operand.vmem [shape: bf16[16,4], index: 2, kind: input, shape index: {}]   ;;  %s1385_s3 = inlined_call_operand.vmem [shape: f32[16,1], index: 3, kind: input, shape index: {}]   ;;  %s1386_s4 = inlined_call_operand.vmem [shape: bf16[8,16], index: 4, kind: input, shape index: {}]   ;;  %s1387_s5 = inlined_call_operand.vmem [shape: f32[8,1], index: 5, kind: input, shape index: {}]   ;;  %s1388_s6 = inlined_call_operand.vmem [shape: bf16[32,8], index: 6, kind: input, shape index: {}]   ;;  %s1389_s7 = inlined_call_operand.vmem [shape: f32[32,1], index: 7, kind: input, shape index: {}]   ;;  %s1390_s8 = inlined_call_operand.vmem [shape: bf16[8,32], index: 8, kind: input, shape index: {}]   ;;  %s1391_s9 = inlined_call_operand.vmem [shape: f32[8,1], index: 9, kind: input, shape index: {}]   ;;  %s1392_s10 = inlined_call_operand.hbm [shape: f32[8,256], index: 10, kind: output, shape index: {}]  }
   0x1   :  { %17 = vsyncpa [#allocation6 + $0x1], 0  ;;  %s1158_s13 = smov 0   ;;  %s1160_s14 = smov 0  }
   0x2   :  { %s1162_s15 = smov 0   ;;  %s1164_s16 = smov 0  }
   0x3 LB: > { %s1179_s17 = sadd.s32 4294967295, %s1097_s16   ;;  %s861_s18 = sadd.s32 4294967294, %s1097_s16   ;;  %s1097_s16 = sphi %s1164_s16, %s1398_s16   ;;  %s1093_s15 = sphi %s1162_s15, %s1397_s15   ;;  %s1089_s14 = sphi %s1160_s14, %s1396_s14   ;;  %s1085_s13 = sphi %s1158_s13, %s1395_s13  }
   0x4   : > { %s1183_s19 = sadd.s32 1, %s1097_s16   ;;  %s245_s20 = sadd.s32 1, %s1093_s15 }
   0x5   : > { %s242_s21 = ssub.s32 %s1097_s16, %s1183_s19  ;;  %p255_p0 = scmp.ne.s32.totalorder %s1093_s15, %s1089_s14 }
   0x6   : > { %p243_p1 = scmp.eq.s32.totalorder %s242_s21, 0  ;;  %p256_p2 = scmp.eq.s32.totalorder %s1179_s17, 1 }
   0x7   : > { %p261_p3 = scmp.ne.s32.totalorder %s1089_s14, %s1085_s13  ;;  %p262_p4 = scmp.eq.s32.totalorder %s861_s18, 1 }
   0x8   : > { %s1194_s22 = scalar_select %p243_p1, %s1093_s15, %s245_s20  }
   0x9   : > { %p1196_p5 = por %p256_p2, %p255_p0  ;;  %p1200_p6 = por %p262_p4, %p261_p3 }
   0xa   : > { %p864_p7 = scmp.ge.s32.totalorder %s1097_s16, 1  ;;  %p314_p8 = scmp.lt.s32.totalorder %s1097_s16, 3 }
   0xc   : > { %p315_p9 = pnand %p864_p7, %p314_p8 }
   0xd   : > { %p351_p10 = scmp.lt.s32.totalorder (!%p315_p9), %s1179_s17, 1  ;;  %s348_s28 = sand.u32 (!%p315_p9), 1, %s1089_s14  }
   0xe   : > { %318 = sbr.rel (%p315_p9) target bundleno = 1296 (0x510), region = 60  ;;  %s865_s30 = sshll.u32 (!%p315_p9), %s348_s28, 3 }
   0xf   : > { %s350_s11 = scalar_lea.vmem (!%p315_p9), [#allocation5], %s865_s30  ;;  %s789_s25 = scalar_lea.sflag (!%p315_p9), [#allocation6], %s348_s28 }
  0x10   : > { %s802_s12 = sshll.u32 (!%p315_p9), %s350_s11, 4  ;;  %s1343_s12 = int_to_ptr.vmem [resolvable:$true] %s802_s12 }
  0x13   : > { %v1209_v0 = vld [vmem:[%s1382_s0 + $0x38] sm:$0xff]   ;;  %v1099_v1 = vmov 0.0   ;;  %v1217_v2 = vld [vmem:[%s1382_s0 + $0x30] sm:$0xff]   ;;  %vm1100_vm0 = vmmov 0   ;;  %v1228_v3 = vld [vmem:[%s1382_s0 + $0x28] sm:$0xff]   ;;  %s352_s26 = scalar_select %p351_p10, %s1179_s17, 1 }
  0x14   : > { %915 = vmatprep.subr.bf16.mxu0 %v1099_v1  ;;  %935 = vmatprep.subr.bf16.mxu1 %v1099_v1  ;;  %v1235_v4 = vld [vmem:[%s1382_s0 + $0x20] sm:$0xff]   ;;  %v1242_v5 = vld [vmem:[%s1382_s0 + $0x18] sm:$0xff]   ;;  %v1250_v6 = vld [vmem:[%s1382_s0 + $0x10] sm:$0xff]   ;;  %v1101_v11 = vmov 0   ;;  %vm487_vm1 = vcmask 1041408   ;;  %vm483_vm2 = vcmask 31744  }
  0x15   : > { %916 = vmatpush3.bf16.msra.mxu0 %v1209_v0  ;;  %931 = vmatprep.mubr.msk.bf16.mxu0 %vm1100_vm0, %v1099_v1  ;;  %v1258_v7 = vld [vmem:[%s1382_s0 + $0x8] sm:$0xff]   ;;  %s866_s29 = sshll.u32 %s352_s26, 1  ;;  %v1265_v8 = vld [vmem:[%s1382_s0] sm:$0xff]   ;;  %v639_v13 = vld [vmem:[%s1389_s7 + $0x18] sm:$0xff]  ;;  %vm542_vm3 = vcmask 130048   ;;  %vm670_vm4 = vcmask 64512  }
  0x16   : > { %917 = vmatprep.subr.bf16.mxu0 %v1099_v1  ;;  %937 = vmatprep.mubr.msk.bf16.mxu1 %vm1100_vm0, %v1099_v1  ;;  %s354_s20 = scalar_lea.vmem %s1383_s1, %s866_s29  ;;  %v466_v10 = vld [vmem:[%s1385_s3] sm:$0xff]  ;;  %v467_v12 = vld [vmem:[%s1385_s3 + $0x8] sm:$0xff]  ;;  %v638_v24 = vld [vmem:[%s1389_s7 + $0x10] sm:$0xff]  ;;  %vm677_vm5 = vcmask 1043456   ;;  %vm743_vm6 = vcmask 261120   ;;  %s884_s29 = sshll.u32 %s1179_s17, 7 }
  0x17   : > { %v372_v9 = vld [vmem:[%s354_s20] sm:$0x3]  ;;  %1024 = vset.pattern.permute.xlu0 %v1101_v11  ;;  %1025 = vset.pattern.permute.xlu1 %v1101_v11  ;;  %v637_v14 = vld [vmem:[%s1389_s7 + $0x8] sm:$0xff]  ;;  %s1341_s21 = scalar_lea.hbm %s1392_s10, %s884_s29  ;;  %s1037_s17 = scalar_lea.vmem %s1343_s12, 128 }
  0x18   : > { %470 = vperm.xlu0 %1024, %v466_v10   ;;  %v1034_v22 = vld [vmem:[%s1384_s2] sm:$0xff]   ;;  %v1036_v55 = vld [vmem:[%s1388_s6 + $0x8] sm:$0xff]   ;;  %p1038_p11 = scmp.ne.s32.totalorder %s1343_s12, %s1037_s17  ;;  %s1102_s26 = smov [#allocation5]  }
  0x19   : > { %918 = vmatpush3.bf16.msra.mxu0 %v1217_v2  ;;  %v536_v23 = vld [vmem:[%s1387_s5] sm:$0xff]  ;;  %s1041_s27 = sshll.u32 %s1102_s26, 4  ;;  %s1042_s27 = int_to_ptr.vmem [resolvable:$false] %s1041_s27 }
  0x1a   : > { %919 = vmatprep.subr.bf16.mxu0 %v1099_v1  ;;  %539 = vperm.xlu1 %1025, %v536_v23   ;;  %v636_v25 = vld [vmem:[%s1389_s7] sm:$0xff]  ;;  %p1039_p12 = pnand %p1038_p11, %p1196_p5  ;;  %s1043_s30 = scalar_lea.vmem %s1042_s27, 256 }
  0x1b   : > { %v737_v26 = vld [vmem:[%s1391_s9] sm:$0xff]  ;;  %p1044_p0 = scmp.lt.s32.totalorder %s1343_s12, %s1042_s27  ;;  %p1045_p1 = scmp.lt.s32.totalorder %s1043_s30, %s1037_s17 }
  0x1c   : > { %475 = vperm.xlu0 %1024, %v467_v12   ;;  %v534_v38 = vld [vmem:[%s1386_s4] sm:$0xf]  ;;  %p1040_p13 = pneg %p1039_p12 }
  0x1d   : > { %920 = vmatpush3.bf16.msra.mxu0 %v1228_v3  ;;  %v1035_v47 = vld [vmem:[%s1388_s6] sm:$0xff]   ;;  %p1046_p2 = por %p1045_p1, %p1044_p0 }
  0x1e   : > { %921 = vmatprep.subr.bf16.mxu0 %v1099_v1  ;;  %652 = vperm.xlu1 %1025, %v638_v24   ;;  %v734_v11 = vld [vmem:[%s1390_s8] sm:$0xf] }
  0x1f   : > { %p1047_p3 = pnand %p1046_p2, %p1040_p13 }
  0x20   : > { %657 = vperm.xlu0 %1024, %v639_v13  }
  0x21   : > { %922 = vmatpush3.bf16.msra.mxu0 %v1235_v4 }
  0x22   : > { %923 = vmatprep.subr.bf16.mxu0 %v1099_v1  ;;  %642 = vperm.xlu1 %1025, %v636_v25  }
  0x24   : > { %647 = vperm.xlu0 %1024, %v637_v14  }
  0x25   : > { %924 = vmatpush3.bf16.msra.mxu0 %v1242_v5 }
  0x26   : > { %925 = vmatprep.subr.bf16.mxu0 %v1099_v1  ;;  %740 = vperm.xlu1 %1025, %v737_v26  }
  0x29   : > { %926 = vmatpush3.bf16.msra.mxu0 %v1250_v6 }
  0x2a   : > { %927 = vmatprep.subr.bf16.mxu0 %v1099_v1 }
  0x2d   : > { %928 = vmatpush3.bf16.msra.mxu0 %v1258_v7 }
  0x2e   : > { %929 = vmatprep.subr.bf16.mxu0 %v1099_v1 }
  0x31   : > { %930 = vmatpush3.bf16.msra.mxu0 %v1265_v8 }
  0x34   : > { %932 = vmatmul.mubr.bf16.vlgmr.msra.gmra.mxu0 %v372_v9 }
  0x35   : > { %969 = vmatprep.mubr.msk.bf16.mxu0 %vm670_vm4, %v1035_v47 }
  0x93   : > { %v471_v27 = vpop.permute.xlu0 %470 }
  0x95   : > { %v540_v39 = vpop.permute.xlu1 %539 }
  0x97   : > { %v476_v31 = vpop.permute.xlu0 %475 }
  0x99   : > { %v653_v57 = vpop.permute.xlu1 %652 }
  0x9b   : > { %v658_v56 = vpop.permute.xlu0 %657 }
  0x9f   : > { %v648_v62 = vpop.permute.xlu0 %647 }
  0xf4   : > { %v455_v15 = vpop.f32.mrf.mxu0 }
  0xf5   : > { %v461_v16 = vpack.c.bf16 %v455_v15, %v455_v15 }
  0xf6   : > { %v933_v17 = vpop.f32.mrf.mxu0 }
  0xf7   : > { %462 = vst [vmem:[#allocation2] sm:$0x3] %v461_v16 }
  0xf8   : > { %v458_v18 = vpop.f32.mrf.mxu0 }
  0xfa   : > { %v934_v19 = vpop.f32.mrf.mxu0 }
  0xfe   : > { %v465_v20 = vld [vmem:[#allocation2] sm:$0x3] }
  0xff   : > { %v489_v21 = vsel %vm487_vm1, %v465_v20, 0 }
 0x100   : > { %936 = vmatpush3.bf16.msra.mxu1 %v489_v21 }
 0x101   : > { %941 = vmatprep.subr.bf16.mxu1 %v1099_v1 }
 0x103   : > { %938 = vmatmul.mubr.msk.bf16.vlgmr.msra.gmra.mxu1 %vm483_vm2, %v1034_v22 }
 0x104   : > { %943 = vmatprep.mubr.msk.bf16.mxu1 %vm1100_vm0, %v1099_v1 }
 0x1c3   : > { %v525_v28 = vpop.f32.mrf.mxu1 }
 0x1c4   : > { %v526_v30 = vadd.f32 %v525_v28, %v471_v27 }
 0x1c5   : > { %v939_v29 = vpop.f32.mrf.mxu1 }
 0x1c6   : > { %v532_v35 = vmax.f32 %v526_v30, 0.0 }
 0x1c7   : > { %v528_v32 = vpop.f32.mrf.mxu1 }
 0x1c8   : > { %v529_v33 = vadd.f32 %v528_v32, %v476_v31 }
 0x1c9   : > { %v940_v34 = vpop.f32.mrf.mxu1 }
 0x1ca   : > { %v533_v36 = vmax.f32 %v529_v33, 0.0 }
 0x1cc   : > { %v535_v37 = vpack.c.bf16 %v533_v36, %v532_v35 }
 0x1ce   : > { %942 = vmatpush3.bf16.msra.mxu1 %v535_v37 }
 0x1cf   : > { %947 = vmatprep.subr.bf16.mxu1 %v1099_v1 }
 0x1d1   : > { %944 = vmatmul.mubr.msk.bf16.vlgmr.msra.gmra.mxu1 %vm542_vm3, %v534_v38 }
 0x1d2   : > { %948 = vmatpush3.bf16.msra.mxu1 %v1209_v0  ;;  %963 = vmatprep.mubr.msk.bf16.mxu1 %vm1100_vm0, %v1099_v1  ;;  %v643_v0 = vpop.permute.xlu1 %642 }
 0x1d3   : > { %949 = vmatprep.subr.bf16.mxu1 %v1099_v1 }
 0x1d6   : > { %950 = vmatpush3.bf16.msra.mxu1 %v1217_v2  ;;  %v741_v12 = vpop.permute.xlu1 %740 }
 0x1d7   : > { %951 = vmatprep.subr.bf16.mxu1 %v1099_v1 }
 0x1da   : > { %952 = vmatpush3.bf16.msra.mxu1 %v1228_v3 }
 0x1db   : > { %953 = vmatprep.subr.bf16.mxu1 %v1099_v1 }
 0x1de   : > { %954 = vmatpush3.bf16.msra.mxu1 %v1235_v4 }
 0x1df   : > { %955 = vmatprep.subr.bf16.mxu1 %v1099_v1 }
 0x1e2   : > { %956 = vmatpush3.bf16.msra.mxu1 %v1242_v5 }
 0x1e3   : > { %957 = vmatprep.subr.bf16.mxu1 %v1099_v1 }
 0x1e6   : > { %958 = vmatpush3.bf16.msra.mxu1 %v1250_v6 }
 0x1e7   : > { %959 = vmatprep.subr.bf16.mxu1 %v1099_v1 }
 0x1ea   : > { %960 = vmatpush3.bf16.msra.mxu1 %v1258_v7 }
 0x1eb   : > { %961 = vmatprep.subr.bf16.mxu1 %v1099_v1 }
 0x1ee   : > { %962 = vmatpush3.bf16.msra.mxu1 %v1265_v8 }
 0x291   : > { %v580_v40 = vpop.f32.mrf.mxu1 }
 0x292   : > { %v581_v41 = vadd.f32 %v580_v40, %v540_v39 }
 0x293   : > { %v945_v42 = vpop.f32.mrf.mxu1 }
 0x294   : > { %v586_v43 = vpack.c.bf16 %v581_v41, %v581_v41 }
 0x295   : > { %v583_v44 = vpop.f32.mrf.mxu1 }
 0x296   : > { %587 = vst [vmem:[#allocation3] sm:$0xf] %v586_v43 }
 0x297   : > { %v946_v45 = vpop.f32.mrf.mxu1 }
 0x29d   : > { %v588_v46 = vld [vmem:[#allocation3] sm:$0xf] }
 0x29e   : > { %964 = vmatmul.mubr.bf16.vlgmr.msra.gmra.mxu1 %v588_v46 }
 0x35e   : > { %v623_v48 = vpop.f32.mrf.mxu1 }
 0x35f   : > { %v629_v49 = vpack.c.bf16 %v623_v48, %v623_v48 }
 0x360   : > { %v965_v50 = vpop.f32.mrf.mxu1 }
 0x361   : > { %630 = vst [vmem:[#allocation4] sm:$0xf] %v629_v49 }
 0x362   : > { %v626_v51 = vpop.f32.mrf.mxu1 }
 0x364   : > { %v966_v52 = vpop.f32.mrf.mxu1 }
 0x368   : > { %v635_v53 = vld [vmem:[#allocation4] sm:$0xf] }
 0x369   : > { %981 = vmatprep.subr.msk.bf16.mxu0 %vm677_vm5, %v635_v53  ;;  %v679_v54 = vsel %vm677_vm5, %v635_v53, 0 }
 0x36a   : > { %968 = vmatpush3.bf16.msra.mxu0 %v679_v54 }
 0x36b   : > { %973 = vmatprep.subr.bf16.mxu0 %v1099_v1 }
 0x36d   : > { %970 = vmatmul.mubr.msk.bf16.vlgmr.msra.gmra.mxu0 %vm670_vm4, %v1036_v55 }
 0x36e   : > { %977 = vmatprep.mubr.msk.bf16.mxu0 %vm1100_vm0, %v1099_v1 }
 0x42d   : > { %v971_v58 = vpop.f32.mrf.mxu0 }
 0x42e   : > { %v724_v60 = vadd.f32 %v971_v58, %v653_v57 }
 0x42f   : > { %v715_v59 = vpop.f32.mrf.mxu0 }
 0x430   : > { %v732_v3 = vmax.f32 %v724_v60, 0.0  ;;  %v716_v4 = vadd.f32 %v715_v59, %v643_v0 }
 0x431   : > { %v972_v61 = vpop.f32.mrf.mxu0 }
 0x432   : > { %v727_v63 = vadd.f32 %v972_v61, %v658_v56  ;;  %v730_v9 = vmax.f32 %v716_v4, 0.0 }
 0x433   : > { %v718_v2 = vpop.f32.mrf.mxu0 }
 0x434   : > { %v733_v5 = vmax.f32 %v727_v63, 0.0  ;;  %v719_v6 = vadd.f32 %v718_v2, %v648_v62 }
 0x436   : > { %v736_v7 = vpack.c.bf16 %v733_v5, %v732_v3  ;;  %v731_v8 = vmax.f32 %v719_v6, 0.0 }
 0x438   : > { %974 = vmatpush3.bf16.msra.mxu0 %v736_v7  ;;  %v735_v10 = vpack.c.bf16 %v731_v8, %v730_v9 }
 0x439   : > { %975 = vmatprep.subr.bf16.mxu0 %v1099_v1 }
 0x43c   : > { %976 = vmatpush3.bf16.msra.mxu0 %v735_v10 }
 0x43f   : > { %978 = vmatmul.mubr.msk.bf16.vlgmr.msra.gmra.mxu0 %vm743_vm6, %v734_v11 }
 0x4ff   : > { %v781_v13 = vpop.f32.mrf.mxu0 }
 0x500   : > { %v782_v14 = vadd.f32 %v781_v13, %v741_v12 }
 0x501   : > { %v979_v1 = vpop.f32.mrf.mxu0 }
 0x502   : > { %787 = vst [vmem:[%s350_s11] sm:$0xff] %v782_v14 }
 0x503   : > { %v784_v15 = vpop.f32.mrf.mxu0 }
 0x504   : > { %1050 = shalt.err (!%p1047_p3)
}
 0x505   : > { %s1051_s29 = scalar_lea.hbm %s1341_s21, 128  ;;  %s1055_s18 = scalar_lea.hbm %s1392_s10, 256 }
 0x506   : > { %p1052_p4 = scmp.ne.s32.totalorder %s1341_s21, %s1051_s29  ;;  %p1056_p9 = scmp.lt.s32.totalorder %s1341_s21, %s1392_s10 }
 0x507   : > { %p1057_p10 = scmp.lt.s32.totalorder %s1055_s18, %s1051_s29 }
 0x508   : > { %p1053_p7 = pnand %p1052_p4, %p1196_p5 }
 0x509   : > { %p1058_p11 = por %p1057_p10, %p1056_p9 }
 0x50a   : > { %p1054_p8 = pneg %p1053_p7 }
 0x50c   : > { %p1059_p12 = pnand %p1058_p11, %p1054_p8 }
 0x50e   : > { %1062 = shalt.err (!%p1059_p12)
}
 0x50f   : > { %982 = dma.vmem_to_hbm [thread:$0]  (%p1196_p5), %s1343_s12, 128, %s1341_s21, %s789_s25   ;;  %v980_v16 = vpop.f32.mrf.mxu0 }
 0x510 PF: > { %p988_p13 = scmp.ge.s32.totalorder %s1097_s16, 2  ;;  %s814_s17 = sand.u32 1, %s1085_s13  }
 0x511   : > { %s815_s27 = scalar_lea.sflag [#allocation6], %s814_s17 }
 0x512   : > { %p985_p0 = pnand %p988_p13, %p1200_p6 }
 0x514   : > { %p986_p1 = pneg %p985_p0 }
 0x516   : > { %1080 = dma.done.wait (%p986_p1), %s815_s27, 128  }
 0x517   : > { %1082 = vsyncadd (%p986_p1), %s815_s27, 4294967168  ;;  %p20_p2 = scmp.ge.s32.totalorder %s1183_s19, 4   ;;  %s1395_s13 = smov %s1089_s14 }
 0x518   : > { %s1396_s14 = smov %s1093_s15  ;;  %s1397_s15 = smov %s1194_s22 }
 0x519   : > { %s1398_s16 = smov %s1183_s19  ;;  %22 = sbr.rel (!%p20_p2) target bundleno = 3 (0x3), region = 95 }
 0x51e   :  { %820 = vsyncpa [#allocation6], 1 }
 0x51f   :  { %822 = vsyncpa [#allocation6 + $0x1], 1 }

</bundles_post_ra>
